<compile_context>
chip_gen: v6e
topology: v6e:2x2x1
jax: 0.10.0
libtpu: 0.0.40
codegen_flags: <defaults>
</compile_context>

<pallas_src>
import functools

import jax
import jax.numpy as jnp
from jax import lax
from jax.experimental import pallas as pl
from jax.experimental.pallas import tpu as pltpu

EPS = 1e-5           # nn.BatchNorm2d default eps
LANE = 128           # vreg lane width: channel / K dims padded to a multiple of this
TILE_M_CAP = 512     # rows per tile (sweep 512-1024 for production shapes)
VMEM_CAP = 56 * 1024 * 1024   # stay under v7x's 64 MiB physical VMEM


def _round_up(n, m=LANE):
    return ((n + m - 1) // m) * m


def _pad_last(a, target):
    pad = target - a.shape[-1]
    if pad == 0:
        return a
    return jnp.pad(a, [(0, 0)] * (a.ndim - 1) + [(0, pad)])


def _pad_rows(a2d, target_rows):
    pad = target_rows - a2d.shape[0]
    if pad == 0:
        return a2d
    return jnp.pad(a2d, ((0, pad), (0, 0)))


# ----------------------------- Pallas kernels -----------------------------

def _mm_stats_kernel(x_ref, w_ref, y_ref, sum_ref, ssq_ref):
    """Matmul tile + per-channel sum / sum-of-squares accumulation.

    sum_ref / ssq_ref are (1, C) OUTPUT blocks whose index_map is constant, so they stay
    VMEM-resident across the whole m-tile axis and are written back to HBM once at the end.
    """
    # NOTE: pl.program_id must be called at the top level of the kernel (NOT inside a
    # pl.when body) so it never ends up inside a lax.cond branch jaxpr.
    m = pl.program_id(0)

    # bf16 x bf16 MXU inputs, f32 accumulation.
    y = jnp.dot(x_ref[...], w_ref[...], preferred_element_type=jnp.float32)
    y_ref[...] = y.astype(y_ref.dtype)

    @pl.when(m == 0)
    def _init():
        sum_ref[...] = jnp.zeros_like(sum_ref)
        ssq_ref[...] = jnp.zeros_like(ssq_ref)

    sum_ref[...] += jnp.sum(y, axis=0, keepdims=True)
    ssq_ref[...] += jnp.sum(y * y, axis=0, keepdims=True)


def _bn_apply_kernel(relu, has_residual, *refs):
    """Elementwise BN affine (+ReLU) (+residual add). Fully parallel over m-tiles."""
    if has_residual:
        y_ref, scale_ref, shift_ref, r_ref, o_ref = refs
    else:
        y_ref, scale_ref, shift_ref, o_ref = refs
        r_ref = None

    out = y_ref[...].astype(jnp.float32) * scale_ref[...] + shift_ref[...]
    if relu:
        out = jnp.maximum(out, 0.0)
    if has_residual:
        out = out + r_ref[...].astype(jnp.float32)
    o_ref[...] = out.astype(o_ref.dtype)


# ----------------------------- fused conv-as-matmul + BN stage -----------------------------

def conv_bn(x2d, w2d, gamma, beta, *, relu, residual=None, out_dtype=jnp.float32):
    """(M, K) @ (K, C) followed by training-mode BatchNorm over the M axis, optional ReLU
    and optional residual add.  x2d/w2d are bf16 with K and C padded to lane multiples."""
    M, K = x2d.shape
    C = w2d.shape[1]
    assert K % LANE == 0 and C % LANE == 0, "pad K / C to lane multiples first"

    # Row tiling: pad M up to a multiple of the tile (padded rows are zero -> contribute
    # nothing to sum / ssq; the true M is used for the mean).
    tile_m = min(TILE_M_CAP, _round_up(M, 8))
    Mp = _round_up(M, tile_m)
    nmt = Mp // tile_m
    xp = _pad_rows(x2d, Mp)

    g = _pad_last(gamma.astype(jnp.float32).reshape(1, -1), C)   # padded channels: gamma=0
    b = _pad_last(beta.astype(jnp.float32).reshape(1, -1), C)    # padded channels: beta=0

    # VMEM sizing: double-buffered streamed tiles + resident weight + small per-channel vecs.
    bytes_needed = (2 * tile_m * K * 2            # x tile (bf16), double buffered
                    + 2 * tile_m * C * 2          # y tile (bf16), double buffered
                    + 2 * tile_m * C * jnp.dtype(out_dtype).itemsize
                    + K * C * 2                   # weight, VMEM resident
                    + 8 * C * 4)                  # sum/ssq/scale/shift
    vmem_limit = int(min(VMEM_CAP, max(32 * 1024 * 1024, 2 * bytes_needed)))

    # ---- pass A: matmul + per-channel stats (reduction over m-tiles -> "arbitrary") ----
    y, s, ss = pl.pallas_call(
        _mm_stats_kernel,
        grid=(nmt,),
        in_specs=[pl.BlockSpec((tile_m, K), lambda m: (m, 0)),   # streamed activation tile
                  pl.BlockSpec((K, C), lambda m: (0, 0))],       # weight: VMEM-resident
        out_specs=(pl.BlockSpec((tile_m, C), lambda m: (m, 0)),  # pre-BN y (bf16)
                   pl.BlockSpec((1, C), lambda m: (0, 0)),       # per-channel sum (resident)
                   pl.BlockSpec((1, C), lambda m: (0, 0))),      # per-channel sum of squares
        out_shape=(jax.ShapeDtypeStruct((Mp, C), jnp.bfloat16),
                   jax.ShapeDtypeStruct((1, C), jnp.float32),
                   jax.ShapeDtypeStruct((1, C), jnp.float32)),
        compiler_params=pltpu.CompilerParams(
            dimension_semantics=("arbitrary",),
            vmem_limit_bytes=vmem_limit),
        cost_estimate=pl.CostEstimate(
            flops=2 * Mp * K * C, transcendentals=0,
            bytes_accessed=int(Mp * K * 2 + K * C * 2 + Mp * C * 2 + 2 * C * 4)),
    )(xp, w2d)

    # ---- per-channel BN affine, hoisted out of the kernel (tiny (1, C) math, done once) ----
    inv_n = 1.0 / float(M)
    mean = s * inv_n
    var = jnp.maximum(ss * inv_n - mean * mean, 0.0)   # biased variance (BN training mode)
    # TODO(synk): Welford-style / centered accumulation if f32 cancellation matters at huge M.
    scale = g * lax.rsqrt(var + EPS)
    shift = b - mean * scale

    # ---- pass B: normalize/affine (+ReLU) (+residual); fully parallel over m-tiles ----
    in_specs = [pl.BlockSpec((tile_m, C), lambda m: (m, 0)),
                pl.BlockSpec((1, C), lambda m: (0, 0)),
                pl.BlockSpec((1, C), lambda m: (0, 0))]
    args = [y, scale, shift]
    if residual is not None:
        assert residual.shape == (M, C)
        in_specs.append(pl.BlockSpec((tile_m, C), lambda m: (m, 0)))
        args.append(_pad_rows(residual, Mp))

    out = pl.pallas_call(
        functools.partial(_bn_apply_kernel, relu, residual is not None),
        grid=(nmt,),
        in_specs=in_specs,
        out_specs=pl.BlockSpec((tile_m, C), lambda m: (m, 0)),
        out_shape=jax.ShapeDtypeStruct((Mp, C), out_dtype),
        compiler_params=pltpu.CompilerParams(
            dimension_semantics=("parallel",),      # independent tiles: megacore on v7x
            vmem_limit_bytes=vmem_limit),
        cost_estimate=pl.CostEstimate(
            flops=4 * Mp * C, transcendentals=0,
            bytes_accessed=int(Mp * C * (2 + jnp.dtype(out_dtype).itemsize)
                               + (Mp * C * 2 if residual is not None else 0))),
    )(*args)

    return out[:M]


# ----------------------------- JAX glue -----------------------------

def im2col(x_nhwc, kh, kw, stride, pad):
    """3x3 patch extraction -> (N*Ho*Wo, C*kh*kw), flattened (ci, kh, kw) to match the
    PyTorch (Cout, Cin, KH, KW) weight layout.  Padded channels (zeros) are kept; the
    corresponding weight rows are zero, so the matmul is exact."""
    N, H, W, C = x_nhwc.shape
    xp = jnp.pad(x_nhwc, ((0, 0), (pad, pad), (pad, pad), (0, 0)))
    Ho = (H + 2 * pad - kh) // stride + 1
    Wo = (W + 2 * pad - kw) // stride + 1
    taps = []
    for i in range(kh):
        for j in range(kw):
            taps.append(xp[:, i:i + stride * Ho:stride, j:j + stride * Wo:stride, :])
    stacked = jnp.stack(taps, axis=-1)                    # (N, Ho, Wo, C, kh*kw)
    return stacked.reshape(N * Ho * Wo, C * kh * kw), Ho, Wo


def _prep_weight(w, cin_pad, cout_pad):
    """PyTorch (O, I, KH, KW) -> zero-padded (cin_pad*KH*KW, cout_pad) bf16 matmul operand,
    K flattened as (ci, kh, kw) to match im2col / channels-last activations."""
    O, I, KH, KW = w.shape
    wp = jnp.pad(w, ((0, cout_pad - O), (0, cin_pad - I), (0, 0), (0, 0)))
    return wp.reshape(cout_pad, cin_pad * KH * KW).T.astype(jnp.bfloat16)


def resnet_bottleneck_forward(x_nchw, params, stride):
    N, Cin, H, W = x_nchw.shape
    Cout = params["w3"].shape[0]
    hidden = Cout // 4

    cin_p, hid_p, cout_p = _round_up(Cin), _round_up(hidden), _round_up(Cout)

    # Channels-last (NHWC) inside the whole block so channels sit on lanes; the entry/exit
    # transposes exist only to match the PyTorch NCHW interface — chain blocks in NHWC.
    x = jnp.transpose(x_nchw, (0, 2, 3, 1)).astype(jnp.float32)

    # ---- conv1 (1x1) + bn1 + relu ----
    x2d = _pad_last(x, cin_p).reshape(N * H * W, cin_p).astype(jnp.bfloat16)
    w1 = _prep_weight(params["w1"], cin_p, hid_p)
    y1 = conv_bn(x2d, w1, params["g1"], params["b1"], relu=True,
                 out_dtype=jnp.bfloat16)                              # (M1, hid_p)

    # ---- conv2 (3x3, stride, pad=1) + bn2 + relu ----
    y1_nhwc = y1.reshape(N, H, W, hid_p)          # keep zero lane padding (weight rows zero)
    cols, Ho, Wo = im2col(y1_nhwc, 3, 3, stride, 1)                   # (M2, hid_p*9) bf16
    w2 = _prep_weight(params["w2"], hid_p, hid_p)
    y2 = conv_bn(cols, w2, params["g2"], params["b2"], relu=True,
                 out_dtype=jnp.bfloat16)                              # (M2, hid_p)

    # ---- shortcut branch ----
    M2 = N * Ho * Wo
    if stride != 1 or Cin != Cout:
        xs = x[:, ::stride, ::stride, :]          # 1x1 stride-s conv = spatial subsample
        xs2d = _pad_last(xs, cin_p).reshape(M2, cin_p).astype(jnp.bfloat16)
        w_sc = _prep_weight(params["w_sc"], cin_p, cout_p)
        shortcut = conv_bn(xs2d, w_sc, params["g_sc"], params["b_sc"], relu=False,
                           out_dtype=jnp.bfloat16)                    # bf16: halve residual HBM read
    else:
        shortcut = _pad_last(x, cout_p).reshape(M2, cout_p)           # identity, f32

    # ---- conv3 (1x1) + bn3 + residual add ----
    w3 = _prep_weight(params["w3"], hid_p, cout_p)
    out2d = conv_bn(y2, w3, params["g3"], params["b3"], relu=False,
                    residual=shortcut, out_dtype=jnp.float32)         # (M2, cout_p)

    out = out2d.reshape(N, Ho, Wo, cout_p)[..., :Cout]
    return jnp.transpose(out, (0, 3, 1, 2))                           # back to NCHW


# ----------------------------- pure-JAX reference -----------------------------

def reference_forward(x, p, stride):
    def conv(x, w, s=1, pad=0):
        return lax.conv_general_dilated(
            x, w, (s, s), [(pad, pad), (pad, pad)],
            dimension_numbers=("NCHW", "OIHW", "NCHW"),
            precision=lax.Precision.HIGHEST)

    def bn(x, g, b):
        mean = jnp.mean(x, axis=(0, 2, 3), keepdims=True)
        var = jnp.mean(jnp.square(x - mean), axis=(0, 2, 3), keepdims=True)
        return (x - mean) * lax.rsqrt(var + EPS) * g.reshape(1, -1, 1, 1) + b.reshape(1, -1, 1, 1)

    Cin, Cout = x.shape[1], p["w3"].shape[0]
    if stride != 1 or Cin != Cout:
        sc = bn(conv(x, p["w_sc"], s=stride), p["g_sc"], p["b_sc"])
    else:
        sc = x
    h = jnp.maximum(bn(conv(x, p["w1"]), p["g1"], p["b1"]), 0.0)
    h = jnp.maximum(bn(conv(h, p["w2"], s=stride, pad=1), p["g2"], p["b2"]), 0.0)
    h = bn(conv(h, p["w3"]), p["g3"], p["b3"])
    return h + sc


# ----------------------------- main -----------------------------

if __name__ == "__main__":
    N, Cin, H, W = 2, 4, 16, 16
    Cout, stride = 16, 2
    hidden = Cout // 4

    key = jax.random.PRNGKey(0)
    k = jax.random.split(key, 6)
    x = jax.random.normal(k[0], (N, Cin, H, W), dtype=jnp.float32)

    params = {
        "w1":   0.2 * jax.random.normal(k[1], (hidden, Cin, 1, 1), dtype=jnp.float32),
        "w2":   0.2 * jax.random.normal(k[2], (hidden, hidden, 3, 3), dtype=jnp.float32),
        "w3":   0.2 * jax.random.normal(k[3], (Cout, hidden, 1, 1), dtype=jnp.float32),
        "w_sc": 0.2 * jax.random.normal(k[4], (Cout, Cin, 1, 1), dtype=jnp.float32),
        "g1": 1.0 + 0.1 * jnp.arange(hidden, dtype=jnp.float32),
        "b1": 0.05 * jnp.arange(hidden, dtype=jnp.float32),
        "g2": 1.0 + 0.1 * jnp.arange(hidden, dtype=jnp.float32),
        "b2": 0.05 * jnp.arange(hidden, dtype=jnp.float32),
        "g3": 1.0 + 0.1 * jnp.arange(Cout, dtype=jnp.float32),
        "b3": 0.05 * jnp.arange(Cout, dtype=jnp.float32),
        "g_sc": 1.0 + 0.1 * jnp.arange(Cout, dtype=jnp.float32),
        "b_sc": 0.05 * jnp.arange(Cout, dtype=jnp.float32),
    }

    out = jax.block_until_ready(resnet_bottleneck_forward(x, params, stride))
    ref = jax.block_until_ready(reference_forward(x, params, stride))

    assert out.shape == ref.shape == (N, Cout, H // stride, W // stride)
    max_err = float(jnp.max(jnp.abs(out - ref)))
    # bf16 MXU operands and bf16 intermediate activations through three BN'd stages vs an
    # f32/HIGHEST reference: combined atol/rtol of 1e-1 (largest errors occur where |ref|
    # is largest, so the rtol term covers them).
    assert jnp.allclose(out, ref, atol=1e-1, rtol=1e-1), max_err

    print("KERNEL_OK")
</pallas_src>

<mosaic_0001>
module attributes {stable_mosaic.version = 11 : i64} {
  func.func @_mm_stats_kernel(%arg0: i32, %arg1: memref<512x128xbf16, #tpu.memory_space<vmem>>, %arg2: memref<128x128xbf16, #tpu.memory_space<vmem>>, %arg3: memref<512x128xbf16, #tpu.memory_space<vmem>>, %arg4: memref<1x128xf32, #tpu.memory_space<vmem>>, %arg5: memref<1x128xf32, #tpu.memory_space<vmem>>) attributes {dimension_semantics = [#tpu.dimension_semantics<arbitrary>], iteration_bounds = array<i64: 1>, scalar_prefetch = 0 : i64, scratch_operands = 0 : i64, tpu.core_type = #tpu.core_type<tc>, window_params = [{transform_indices = @transform_0, window_bounds = array<i64: 512, 128>}, {pipeline_mode = #tpu.pipeline_mode<synchronous>, transform_indices = @transform_1, window_bounds = array<i64: 128, 128>}, {transform_indices = @transform_2, window_bounds = array<i64: 512, 128>}, {pipeline_mode = #tpu.pipeline_mode<synchronous>, transform_indices = @transform_3, window_bounds = array<i64: 1, 128>}, {pipeline_mode = #tpu.pipeline_mode<synchronous>, transform_indices = @transform_4, window_bounds = array<i64: 1, 128>}]} {
    %c0 = arith.constant 0 : index
    %c0_0 = arith.constant 0 : index
    %0 = vector.load %arg1[%c0, %c0_0] : memref<512x128xbf16, #tpu.memory_space<vmem>>, vector<512x128xbf16>
    %c0_1 = arith.constant 0 : index
    %c0_2 = arith.constant 0 : index
    %1 = vector.load %arg2[%c0_1, %c0_2] : memref<128x128xbf16, #tpu.memory_space<vmem>>, vector<128x128xbf16>
    %cst = arith.constant dense<0.000000e+00> : vector<512x128xf32>
    %2 = tpu.matmul %0, %1, %cst {dimension_numbers = #tpu.dot_dimension_numbers<[1], [0], [0], [1], [0, 0, 1, 1], [], []>} : vector<512x128xbf16>, vector<128x128xbf16>, vector<512x128xf32> -> vector<512x128xf32>
    %3 = arith.truncf %2 : vector<512x128xf32> to vector<512x128xbf16>
    %c0_3 = arith.constant 0 : index
    %c0_4 = arith.constant 0 : index
    %4 = vector.load %arg3[%c0_3, %c0_4] : memref<512x128xbf16, #tpu.memory_space<vmem>>, vector<512x128xbf16>
    tpu.vector_store %arg3[%c0_3, %c0_4], %3 {strides = array<i32>} : memref<512x128xbf16, #tpu.memory_space<vmem>>, vector<512x128xbf16>,
    %c0_i32 = arith.constant 0 : i32
    %5 = arith.cmpi eq, %arg0, %c0_i32 : i32
    %6 = arith.extui %5 : i1 to i32
    %c0_i32_5 = arith.constant 0 : i32
    %7 = arith.cmpi ne, %6, %c0_i32_5 : i32
    scf.if %7 {
      %cst_16 = arith.constant 0.000000e+00 : f32
      %19 = vector.broadcast %cst_16 : f32 to vector<1x128xf32>
      %c0_17 = arith.constant 0 : index
      %c0_18 = arith.constant 0 : index
      %20 = vector.load %arg4[%c0_17, %c0_18] : memref<1x128xf32, #tpu.memory_space<vmem>>, vector<1x128xf32>
      tpu.vector_store %arg4[%c0_17, %c0_18], %19 {strides = array<i32>} : memref<1x128xf32, #tpu.memory_space<vmem>>, vector<1x128xf32>,
      %cst_19 = arith.constant 0.000000e+00 : f32
      %21 = vector.broadcast %cst_19 : f32 to vector<1x128xf32>
      %c0_20 = arith.constant 0 : index
      %c0_21 = arith.constant 0 : index
      %22 = vector.load %arg5[%c0_20, %c0_21] : memref<1x128xf32, #tpu.memory_space<vmem>>, vector<1x128xf32>
      tpu.vector_store %arg5[%c0_20, %c0_21], %21 {strides = array<i32>} : memref<1x128xf32, #tpu.memory_space<vmem>>, vector<1x128xf32>,
    } else {
    }
    %c0_6 = arith.constant 0 : index
    %c0_7 = arith.constant 0 : index
    %8 = vector.load %arg4[%c0_6, %c0_7] : memref<1x128xf32, #tpu.memory_space<vmem>>, vector<1x128xf32>
    %cst_8 = arith.constant dense<0.000000e+00> : vector<128xf32>
    %9 = vector.multi_reduction <add>, %2, %cst_8 [0] : vector<512x128xf32> to vector<128xf32>
    %10 = vector.shape_cast %9 : vector<128xf32> to vector<1x128xf32>
    %11 = arith.addf %8, %10 : vector<1x128xf32>
    %c0_9 = arith.constant 0 : index
    %c0_10 = arith.constant 0 : index
    %12 = vector.load %arg4[%c0_9, %c0_10] : memref<1x128xf32, #tpu.memory_space<vmem>>, vector<1x128xf32>
    tpu.vector_store %arg4[%c0_9, %c0_10], %11 {strides = array<i32>} : memref<1x128xf32, #tpu.memory_space<vmem>>, vector<1x128xf32>,
    %c0_11 = arith.constant 0 : index
    %c0_12 = arith.constant 0 : index
    %13 = vector.load %arg5[%c0_11, %c0_12] : memref<1x128xf32, #tpu.memory_space<vmem>>, vector<1x128xf32>
    %14 = arith.mulf %2, %2 : vector<512x128xf32>
    %cst_13 = arith.constant dense<0.000000e+00> : vector<128xf32>
    %15 = vector.multi_reduction <add>, %14, %cst_13 [0] : vector<512x128xf32> to vector<128xf32>
    %16 = vector.shape_cast %15 : vector<128xf32> to vector<1x128xf32>
    %17 = arith.addf %13, %16 : vector<1x128xf32>
    %c0_14 = arith.constant 0 : index
    %c0_15 = arith.constant 0 : index
    %18 = vector.load %arg5[%c0_14, %c0_15] : memref<1x128xf32, #tpu.memory_space<vmem>>, vector<1x128xf32>
    tpu.vector_store %arg5[%c0_14, %c0_15], %17 {strides = array<i32>} : memref<1x128xf32, #tpu.memory_space<vmem>>, vector<1x128xf32>,
    return
  }
  func.func @transform_0(%arg0: i32) -> (i32, i32) {
    %c0_i32 = arith.constant 0 : i32
    %c0_i32_0 = arith.constant 0 : i32
    return %arg0, %c0_i32 : i32, i32
  }
  func.func @transform_1(%arg0: i32) -> (i32, i32) {
    %c0_i32 = arith.constant 0 : i32
    %c0_i32_0 = arith.constant 0 : i32
    %c0_i32_1 = arith.constant 0 : i32
    return %c0_i32, %c0_i32_0 : i32, i32
  }
  func.func @transform_2(%arg0: i32) -> (i32, i32) {
    %c0_i32 = arith.constant 0 : i32
    %c0_i32_0 = arith.constant 0 : i32
    return %arg0, %c0_i32 : i32, i32
  }
  func.func @transform_3(%arg0: i32) -> (i32, i32) {
    %c0_i32 = arith.constant 0 : i32
    %c0_i32_0 = arith.constant 0 : i32
    %c0_i32_1 = arith.constant 0 : i32
    return %c0_i32, %c0_i32_0 : i32, i32
  }
  func.func @transform_4(%arg0: i32) -> (i32, i32) {
    %c0_i32 = arith.constant 0 : i32
    %c0_i32_0 = arith.constant 0 : i32
    %c0_i32_1 = arith.constant 0 : i32
    return %c0_i32, %c0_i32_0 : i32, i32
  }
}

</mosaic_0001>

<bundles_post_ra>
// kernel: tpu_custom_call.1
= control target key start
LH: loop header
LB: loop body
LE: loop exit
PB: predicated region body
PF: predicated region fallthrough
CT: control target
= control target key end

     0   :  { %10 = vsyncpa [#allocation3], 0  ;;  %s2133_s0 = inlined_call_operand.hbm [shape: bf16[512,128], index: 0, kind: input, shape index: {}]   ;;  %s2134_s1 = inlined_call_operand.hbm [shape: bf16[128,128], index: 1, kind: input, shape index: {}]   ;;  %s2135_s2 = inlined_call_operand.hbm [shape: bf16[512,128], index: 2, kind: output, shape index: {0}]   ;;  %s2136_s3 = inlined_call_operand.hbm [shape: f32[1,128], index: 3, kind: output, shape index: {1}]   ;;  %s2137_s4 = inlined_call_operand.hbm [shape: f32[1,128], index: 4, kind: output, shape index: {2}]  }
   0x1   :  { %11 = vsyncpa [#allocation6], 0 }
   0x2   :  { %12 = vsyncpa [#allocation4], 0 }
   0x3   :  { %13 = vsyncpa [#allocation9], 0  ;;  %s1884_s15 = smov [#allocation2]  }
   0x4   :  { %s19_s16 = sshll.u32 %s1884_s15, 4  ;;  %s20_s16 = int_to_ptr.vmem [resolvable:$true] %s19_s16 }
   0x5   :  { %s1784_s17 = scalar_lea.vmem %s20_s16, 4096  ;;  %p1789_p1 = scmp.lt.s32.totalorder %s20_s16, %s20_s16 }
   0x6   :  { %p1785_p0 = scmp.ne.s32.totalorder %s20_s16, %s1784_s17  ;;  %p1790_p2 = scmp.lt.s32.totalorder %s1784_s17, %s1784_s17 }
   0x8   :  { %p1791_p3 = por %p1790_p2, %p1789_p1 }
   0xa   :  { %p1792_p4 = pnand %p1791_p3, %p1785_p0 }
   0xc   :  { %1795 = shalt.err (!%p1792_p4)
}
   0xd   :  { %s1885_s18 = smov 64   ;;  %s1886_s19 = smov 4  }
   0xe   :  { %25 = dma.hbm_to_vmem [thread:$0]  %s2133_s0, 4096, %s20_s16, [#allocation3], %s1885_s18, %s1885_s18, %s1886_s19  }
   0xf   :  { %s1887_s22 = smov [#allocation5]  }
  0x10   :  { %s31_s23 = sshll.u32 %s1887_s22, 4  ;;  %s32_s23 = int_to_ptr.vmem [resolvable:$true] %s31_s23 }
  0x11   :  { %s1804_s24 = scalar_lea.vmem %s32_s23, 1024  ;;  %p1809_p6 = scmp.lt.s32.totalorder %s32_s23, %s32_s23 }
  0x12   :  { %p1805_p5 = scmp.ne.s32.totalorder %s32_s23, %s1804_s24  ;;  %p1810_p7 = scmp.lt.s32.totalorder %s1804_s24, %s1804_s24 }
  0x14   :  { %p1811_p8 = por %p1810_p7, %p1809_p6 }
  0x16   :  { %p1812_p9 = pnand %p1811_p8, %p1805_p5 }
  0x18   :  { %1815 = shalt.err (!%p1812_p9)
}
  0x19   :  { %37 = dma.hbm_to_vmem [thread:$0]  %s2134_s1, 1024, %s32_s23, [#allocation6], %s1885_s18, %s1885_s18, %s1886_s19  }
  0x1a   :  { %1876 = dma.done.wait [#allocation3], 4096  }
  0x1b   :  { %1877 = vsyncadd [#allocation3], 4294963200 }
  0x1c   :  { %1878 = dma.done.wait [#allocation6], 1024  }
  0x1d   :  { %1879 = vsyncadd [#allocation6], 4294966272  ;;  %v1736_v0 = vld [vmem:[#allocation5 + $0x38] sm:$0xff]   ;;  %v1737_v1 = vld [vmem:[#allocation5 + $0x30] sm:$0xff]   ;;  %v1888_v60 = vmov 0.0   ;;  %s1889_s0 = smov [#allocation7]  }
  0x1e   :  { %1632 = vmatprep.subr.bf16.mxu0 %v1736_v0  ;;  %1712 = vmatprep.subr.bf16.mxu1 %v1736_v0  ;;  %v1738_v2 = vld [vmem:[#allocation5 + $0x28] sm:$0xff]   ;;  %v1739_v3 = vld [vmem:[#allocation5 + $0x20] sm:$0xff]   ;;  %v1740_v5 = vld [vmem:[#allocation5 + $0x18] sm:$0xff]   ;;  %978 = vst [vmem:[#allocation8] sm:$0x1] %v1888_v60  ;;  %s1193_s1 = sshll.u32 %s1889_s0, 4  ;;  %s1194_s1 = int_to_ptr.vmem [resolvable:$true] %s1193_s1 }
  0x1f   :  { %1633 = vmatpush3.bf16.msra.mxu0 %v1736_v0  ;;  %1720 = vmatpush3.bf16.msra.mxu1 %v1736_v0  ;;  %v1744_v4 = vld [vmem:[#allocation2] sm:$0xff]   ;;  %v1741_v6 = vld [vmem:[#allocation5 + $0x10] sm:$0xff]   ;;  %v1742_v7 = vld [vmem:[#allocation5 + $0x8] sm:$0xff]   ;;  %979 = vst [vmem:[#allocation10] sm:$0x1] %v1888_v60  ;;  %s1816_s27 = scalar_lea.vmem %s1194_s1, 4096  ;;  %p1821_p11 = scmp.lt.s32.totalorder %s1194_s1, %s1194_s1 }
  0x20   :  { %1634 = vmatprep.subr.bf16.mxu0 %v1737_v1  ;;  %1713 = vmatprep.subr.bf16.mxu1 %v1737_v1  ;;  %v1743_v8 = vld [vmem:[#allocation5] sm:$0xff]   ;;  %v1745_v10 = vld [vmem:[#allocation2 + $0x8] sm:$0xff]   ;;  %v1746_v11 = vld [vmem:[#allocation2 + $0x10] sm:$0xff]   ;;  %p1817_p10 = scmp.ne.s32.totalorder %s1194_s1, %s1816_s27  ;;  %p1822_p12 = scmp.lt.s32.totalorder %s1816_s27, %s1816_s27 }
  0x21   :  { %1648 = vmatprep.mubr.bf16.mxu0 %v1744_v4  ;;  %v1760_v9 = vld [vmem:[#allocation2 + $0x80] sm:$0xff]   ;;  %v1761_v12 = vld [vmem:[#allocation2 + $0x88] sm:$0xff]   ;;  %v1762_v13 = vld [vmem:[#allocation2 + $0x90] sm:$0xff]  }
  0x22   :  { %1680 = vmatprep.mubr.bf16.mxu1 %v1760_v9  ;;  %v1747_v14 = vld [vmem:[#allocation2 + $0x18] sm:$0xff]   ;;  %v1748_v15 = vld [vmem:[#allocation2 + $0x20] sm:$0xff]   ;;  %v1749_v18 = vld [vmem:[#allocation2 + $0x28] sm:$0xff]   ;;  %p1823_p13 = por %p1822_p12, %p1821_p11 }
  0x23   :  { %1635 = vmatpush3.bf16.msra.mxu0 %v1737_v1  ;;  %1721 = vmatpush3.bf16.msra.mxu1 %v1737_v1  ;;  %v1763_v16 = vld [vmem:[#allocation2 + $0x98] sm:$0xff]   ;;  %v1764_v17 = vld [vmem:[#allocation2 + $0xa0] sm:$0xff]   ;;  %v1765_v19 = vld [vmem:[#allocation2 + $0xa8] sm:$0xff]  }
  0x24   :  { %1636 = vmatprep.subr.bf16.mxu0 %v1738_v2  ;;  %1714 = vmatprep.subr.bf16.mxu1 %v1738_v2  ;;  %v1750_v20 = vld [vmem:[#allocation2 + $0x30] sm:$0xff]   ;;  %v1751_v22 = vld [vmem:[#allocation2 + $0x38] sm:$0xff]   ;;  %v1752_v24 = vld [vmem:[#allocation2 + $0x40] sm:$0xff]   ;;  %p1824_p0 = pnand %p1823_p13, %p1817_p10 }
  0x25   :  { %v1766_v21 = vld [vmem:[#allocation2 + $0xb0] sm:$0xff]   ;;  %v1767_v23 = vld [vmem:[#allocation2 + $0xb8] sm:$0xff]   ;;  %v1768_v25 = vld [vmem:[#allocation2 + $0xc0] sm:$0xff]  }
  0x26   :  { %v1753_v26 = vld [vmem:[#allocation2 + $0x48] sm:$0xff]   ;;  %v1754_v28 = vld [vmem:[#allocation2 + $0x50] sm:$0xff]   ;;  %v1755_v30 = vld [vmem:[#allocation2 + $0x58] sm:$0xff]  }
  0x27   :  { %1637 = vmatpush3.bf16.msra.mxu0 %v1738_v2  ;;  %1722 = vmatpush3.bf16.msra.mxu1 %v1738_v2  ;;  %v1769_v27 = vld [vmem:[#allocation2 + $0xc8] sm:$0xff]   ;;  %v1770_v29 = vld [vmem:[#allocation2 + $0xd0] sm:$0xff]   ;;  %v1771_v31 = vld [vmem:[#allocation2 + $0xd8] sm:$0xff]  }
  0x28   :  { %1638 = vmatprep.subr.bf16.mxu0 %v1739_v3  ;;  %1715 = vmatprep.subr.bf16.mxu1 %v1739_v3  ;;  %v1756_v32 = vld [vmem:[#allocation2 + $0x60] sm:$0xff]   ;;  %v1757_v34 = vld [vmem:[#allocation2 + $0x68] sm:$0xff]   ;;  %v1758_v36 = vld [vmem:[#allocation2 + $0x70] sm:$0xff]  }
  0x29   :  { %v1772_v33 = vld [vmem:[#allocation2 + $0xe0] sm:$0xff]   ;;  %v1773_v35 = vld [vmem:[#allocation2 + $0xe8] sm:$0xff]   ;;  %v1774_v37 = vld [vmem:[#allocation2 + $0xf0] sm:$0xff]  }
  0x2a   :  { %v1759_v38 = vld [vmem:[#allocation2 + $0x78] sm:$0xff]  }
  0x2b   :  { %1639 = vmatpush3.bf16.msra.mxu0 %v1739_v3  ;;  %1723 = vmatpush3.bf16.msra.mxu1 %v1739_v3  ;;  %v1775_v39 = vld [vmem:[#allocation2 + $0xf8] sm:$0xff]  }
  0x2c   :  { %1640 = vmatprep.subr.bf16.mxu0 %v1740_v5  ;;  %1716 = vmatprep.subr.bf16.mxu1 %v1740_v5 }
  0x2f   :  { %1641 = vmatpush3.bf16.msra.mxu0 %v1740_v5  ;;  %1724 = vmatpush3.bf16.msra.mxu1 %v1740_v5 }
  0x30   :  { %1642 = vmatprep.subr.bf16.mxu0 %v1741_v6  ;;  %1717 = vmatprep.subr.bf16.mxu1 %v1741_v6 }
  0x33   :  { %1643 = vmatpush3.bf16.msra.mxu0 %v1741_v6  ;;  %1725 = vmatpush3.bf16.msra.mxu1 %v1741_v6 }
  0x34   :  { %1644 = vmatprep.subr.bf16.mxu0 %v1742_v7  ;;  %1718 = vmatprep.subr.bf16.mxu1 %v1742_v7 }
  0x37   :  { %1645 = vmatpush3.bf16.msra.mxu0 %v1742_v7  ;;  %1726 = vmatpush3.bf16.msra.mxu1 %v1742_v7 }
  0x38   :  { %1646 = vmatprep.subr.bf16.mxu0 %v1743_v8  ;;  %1719 = vmatprep.subr.bf16.mxu1 %v1743_v8 }
  0x3b   :  { %1647 = vmatpush3.bf16.msra.mxu0 %v1743_v8  ;;  %1727 = vmatpush3.bf16.msra.mxu1 %v1743_v8 }
  0x3e   :  { %1649 = vmatmul.mubr.bf16.vlgmr.msra.gmra.mxu0 %v1745_v10  ;;  %1681 = vmatmul.mubr.bf16.vlgmr.msra.gmra.mxu1 %v1761_v12 }
  0x3f   :  { %1652 = vmatprep.mubr.bf16.mxu0 %v1746_v11  ;;  %1684 = vmatprep.mubr.bf16.mxu1 %v1762_v13 }
  0x46   :  { %1653 = vmatmul.mubr.bf16.gmra.mxu0 %v1747_v14  ;;  %1685 = vmatmul.mubr.bf16.gmra.mxu1 %v1763_v16 }
  0x47   :  { %1656 = vmatprep.mubr.bf16.mxu0 %v1748_v15  ;;  %1688 = vmatprep.mubr.bf16.mxu1 %v1764_v17 }
  0x4e   :  { %1657 = vmatmul.mubr.bf16.gmra.mxu0 %v1749_v18  ;;  %1689 = vmatmul.mubr.bf16.gmra.mxu1 %v1765_v19 }
  0x4f   :  { %1660 = vmatprep.mubr.bf16.mxu0 %v1750_v20  ;;  %1692 = vmatprep.mubr.bf16.mxu1 %v1766_v21 }
  0x56   :  { %1661 = vmatmul.mubr.bf16.gmra.mxu0 %v1751_v22  ;;  %1693 = vmatmul.mubr.bf16.gmra.mxu1 %v1767_v23 }
  0x57   :  { %1664 = vmatprep.mubr.bf16.mxu0 %v1752_v24  ;;  %1696 = vmatprep.mubr.bf16.mxu1 %v1768_v25 }
  0x5e   :  { %1665 = vmatmul.mubr.bf16.gmra.mxu0 %v1753_v26  ;;  %1697 = vmatmul.mubr.bf16.gmra.mxu1 %v1769_v27 }
  0x5f   :  { %1668 = vmatprep.mubr.bf16.mxu0 %v1754_v28  ;;  %1700 = vmatprep.mubr.bf16.mxu1 %v1770_v29 }
  0x66   :  { %1669 = vmatmul.mubr.bf16.gmra.mxu0 %v1755_v30  ;;  %1701 = vmatmul.mubr.bf16.gmra.mxu1 %v1771_v31 }
  0x67   :  { %1672 = vmatprep.mubr.bf16.mxu0 %v1756_v32  ;;  %1704 = vmatprep.mubr.bf16.mxu1 %v1772_v33 }
  0x6e   :  { %1673 = vmatmul.mubr.bf16.gmra.mxu0 %v1757_v34  ;;  %1705 = vmatmul.mubr.bf16.gmra.mxu1 %v1773_v35 }
  0x6f   :  { %1676 = vmatprep.mubr.bf16.mxu0 %v1758_v36  ;;  %1708 = vmatprep.mubr.bf16.mxu1 %v1774_v37 }
  0x76   :  { %1677 = vmatmul.mubr.bf16.gmra.mxu0 %v1759_v38  ;;  %1709 = vmatmul.mubr.bf16.gmra.mxu1 %v1775_v39 }
  0xfe   :  { %v1650_v40 = vpop.f32.mrf.mxu0  ;;  %v1929_v41 = vpop.f32.mrf.mxu1 }
  0xff   :  { %v1055_v57 = vmul.f32 %v1650_v40, %v1650_v40 }
 0x100   :  { %v399_v42 = vpop.f32.mrf.mxu0  ;;  %v1931_v43 = vpop.f32.mrf.mxu1 }
 0x101   :  { %v1053_v48 = vmul.f32 %v399_v42, %v399_v42 }
 0x102   :  { %v1651_v44 = vpop.f32.mrf.mxu0  ;;  %v1933_v45 = vpop.f32.mrf.mxu1 }
 0x103   :  { %v1409_v46 = vpack.c.bf16 %v1651_v44, %v1650_v40  ;;  %v1489_v47 = vpack.c.bf16 %v1933_v45, %v1929_v41  ;;  %v1056_v63 = vmul.f32 %v1651_v44, %v1651_v44 }
 0x104   :  { %v402_v49 = vpop.f32.mrf.mxu0  ;;  %v1937_v50 = vpop.f32.mrf.mxu1 }
 0x105   :  { %1561 = vst [vmem:[#allocation7 + $0x8] sm:$0xff] %v1409_v46   ;;  %v1404_v51 = vpack.c.bf16 %v402_v49, %v399_v42  ;;  %v981_v52 = vadd.f32 %v402_v49, %v399_v42  ;;  %v1054_v53 = vmul.f32 %v402_v49, %v402_v49  ;;  %1577 = vst [vmem:[#allocation7 + $0x88] sm:$0xff] %v1489_v47  }
 0x106   :  { %v1484_v54 = vpack.c.bf16 %v1937_v50, %v1931_v43  ;;  %v1654_v55 = vpop.f32.mrf.mxu0  ;;  %v1941_v56 = vpop.f32.mrf.mxu1 }
 0x107   :  { %1405 = vst [vmem:[#allocation7] sm:$0xff] %v1404_v51   ;;  %v982_v58 = vadd.f32 %v1650_v40, %v981_v52  ;;  %v1117_v59 = vadd.f32 %v1054_v53, %v1053_v48  ;;  %v1059_v18 = vmul.f32 %v1654_v55, %v1654_v55 }
 0x108   :  { %1576 = vst [vmem:[#allocation7 + $0x80] sm:$0xff] %v1484_v54   ;;  %v415_v61 = vpop.f32.mrf.mxu0  ;;  %v1943_v62 = vpop.f32.mrf.mxu1 }
 0x109   :  { %v1118_v0 = vadd.f32 %v1117_v59, %v1055_v57  ;;  %v983_v1 = vadd.f32 %v1651_v44, %v982_v58  ;;  %v1057_v5 = vmul.f32 %v415_v61, %v415_v61 }
 0x10a   :  { %v1655_v2 = vpop.f32.mrf.mxu0  ;;  %v1945_v3 = vpop.f32.mrf.mxu1 }
 0x10b   :  { %v984_v4 = vadd.f32 %v983_v1, %v415_v61  ;;  %v1119_v6 = vadd.f32 %v1118_v0, %v1056_v63  ;;  %v1419_v7 = vpack.c.bf16 %v1655_v2, %v1654_v55  ;;  %v1499_v9 = vpack.c.bf16 %v1945_v3, %v1941_v56 }
 0x10c   :  { %v418_v8 = vpop.f32.mrf.mxu0  ;;  %v1949_v10 = vpop.f32.mrf.mxu1  ;;  %v1060_v23 = vmul.f32 %v1655_v2, %v1655_v2 }
 0x10d   :  { %v1120_v11 = vadd.f32 %v1119_v6, %v1057_v5  ;;  %1563 = vst [vmem:[#allocation7 + $0x18] sm:$0xff] %v1419_v7   ;;  %v1414_v12 = vpack.c.bf16 %v418_v8, %v415_v61  ;;  %v985_v13 = vadd.f32 %v984_v4, %v418_v8  ;;  %v1058_v14 = vmul.f32 %v418_v8, %v418_v8 }
 0x10e   :  { %v1658_v15 = vpop.f32.mrf.mxu0  ;;  %1579 = vst [vmem:[#allocation7 + $0x98] sm:$0xff] %v1499_v9   ;;  %v1494_v16 = vpack.c.bf16 %v1949_v10, %v1943_v62  ;;  %v1953_v17 = vpop.f32.mrf.mxu1 }
 0x10f   :  { %1562 = vst [vmem:[#allocation7 + $0x10] sm:$0xff] %v1414_v12   ;;  %v986_v19 = vadd.f32 %v1654_v55, %v985_v13  ;;  %v1121_v20 = vadd.f32 %v1120_v11, %v1058_v14  ;;  %v1063_v44 = vmul.f32 %v1658_v15, %v1658_v15 }
 0x110   :  { %v431_v21 = vpop.f32.mrf.mxu0  ;;  %1578 = vst [vmem:[#allocation7 + $0x90] sm:$0xff] %v1494_v16   ;;  %v1955_v22 = vpop.f32.mrf.mxu1 }
 0x111   :  { %v1122_v24 = vadd.f32 %v1121_v20, %v1059_v18  ;;  %v987_v25 = vadd.f32 %v1655_v2, %v986_v19  ;;  %v1061_v29 = vmul.f32 %v431_v21, %v431_v21 }
 0x112   :  { %v1659_v26 = vpop.f32.mrf.mxu0  ;;  %v1957_v27 = vpop.f32.mrf.mxu1 }
 0x113   :  { %v988_v28 = vadd.f32 %v987_v25, %v431_v21  ;;  %v1123_v30 = vadd.f32 %v1122_v24, %v1060_v23  ;;  %v1429_v31 = vpack.c.bf16 %v1659_v26, %v1658_v15  ;;  %v1509_v33 = vpack.c.bf16 %v1957_v27, %v1953_v17 }
 0x114   :  { %v434_v32 = vpop.f32.mrf.mxu0  ;;  %v1961_v34 = vpop.f32.mrf.mxu1  ;;  %v1064_v51 = vmul.f32 %v1659_v26, %v1659_v26 }
 0x115   :  { %v1124_v35 = vadd.f32 %v1123_v30, %v1061_v29  ;;  %1565 = vst [vmem:[#allocation7 + $0x28] sm:$0xff] %v1429_v31   ;;  %v1424_v36 = vpack.c.bf16 %v434_v32, %v431_v21  ;;  %v989_v37 = vadd.f32 %v988_v28, %v434_v32  ;;  %v1062_v38 = vmul.f32 %v434_v32, %v434_v32 }
 0x116   :  { %v1662_v39 = vpop.f32.mrf.mxu0  ;;  %1581 = vst [vmem:[#allocation7 + $0xa8] sm:$0xff] %v1509_v33   ;;  %v1504_v40 = vpack.c.bf16 %v1961_v34, %v1955_v22  ;;  %v1965_v42 = vpop.f32.mrf.mxu1 }
 0x117   :  { %1564 = vst [vmem:[#allocation7 + $0x20] sm:$0xff] %v1424_v36   ;;  %v990_v46 = vadd.f32 %v1658_v15, %v989_v37  ;;  %v1125_v47 = vadd.f32 %v1124_v35, %v1062_v38  ;;  %v1067_v9 = vmul.f32 %v1662_v39, %v1662_v39 }
 0x118   :  { %v447_v48 = vpop.f32.mrf.mxu0  ;;  %1580 = vst [vmem:[#allocation7 + $0xa0] sm:$0xff] %v1504_v40   ;;  %v1967_v49 = vpop.f32.mrf.mxu1 }
 0x119   :  { %v1126_v52 = vadd.f32 %v1125_v47, %v1063_v44  ;;  %v991_v53 = vadd.f32 %v1659_v26, %v990_v46  ;;  %v1065_v58 = vmul.f32 %v447_v48, %v447_v48 }
 0x11a   :  { %v1663_v54 = vpop.f32.mrf.mxu0  ;;  %v1969_v55 = vpop.f32.mrf.mxu1 }
 0x11b   :  { %v992_v57 = vadd.f32 %v991_v53, %v447_v48  ;;  %v1127_v59 = vadd.f32 %v1126_v52, %v1064_v51  ;;  %v1439_v60 = vpack.c.bf16 %v1663_v54, %v1662_v39  ;;  %v1519_v63 = vpack.c.bf16 %v1969_v55, %v1965_v42 }
 0x11c   :  { %v450_v61 = vpop.f32.mrf.mxu0  ;;  %v1973_v0 = vpop.f32.mrf.mxu1  ;;  %v1068_v15 = vmul.f32 %v1663_v54, %v1663_v54 }
 0x11d   :  { %v1128_v1 = vadd.f32 %v1127_v59, %v1065_v58  ;;  %1567 = vst [vmem:[#allocation7 + $0x38] sm:$0xff] %v1439_v60   ;;  %v1434_v2 = vpack.c.bf16 %v450_v61, %v447_v48  ;;  %v993_v4 = vadd.f32 %v992_v57, %v450_v61  ;;  %v1066_v5 = vmul.f32 %v450_v61, %v450_v61 }
 0x11e   :  { %v1666_v6 = vpop.f32.mrf.mxu0  ;;  %1583 = vst [vmem:[#allocation7 + $0xb8] sm:$0xff] %v1519_v63   ;;  %v1514_v7 = vpack.c.bf16 %v1973_v0, %v1967_v49  ;;  %v1977_v8 = vpop.f32.mrf.mxu1 }
 0x11f   :  { %1566 = vst [vmem:[#allocation7 + $0x30] sm:$0xff] %v1434_v2   ;;  %v994_v11 = vadd.f32 %v1662_v39, %v993_v4  ;;  %v1129_v12 = vadd.f32 %v1128_v1, %v1066_v5  ;;  %v1071_v38 = vmul.f32 %v1666_v6, %v1666_v6 }
 0x120   :  { %v463_v13 = vpop.f32.mrf.mxu0  ;;  %1582 = vst [vmem:[#allocation7 + $0xb0] sm:$0xff] %v1514_v7   ;;  %v1979_v14 = vpop.f32.mrf.mxu1 }
 0x121   :  { %v1130_v16 = vadd.f32 %v1129_v12, %v1067_v9  ;;  %v995_v18 = vadd.f32 %v1663_v54, %v994_v11  ;;  %v1069_v23 = vmul.f32 %v463_v13, %v463_v13 }
 0x122   :  { %v1667_v19 = vpop.f32.mrf.mxu0  ;;  %v1981_v20 = vpop.f32.mrf.mxu1 }
 0x123   :  { %v996_v21 = vadd.f32 %v995_v18, %v463_v13  ;;  %v1131_v24 = vadd.f32 %v1130_v16, %v1068_v15  ;;  %v1449_v25 = vpack.c.bf16 %v1667_v19, %v1666_v6  ;;  %v1529_v28 = vpack.c.bf16 %v1981_v20, %v1977_v8 }
 0x124   :  { %v466_v26 = vpop.f32.mrf.mxu0  ;;  %v1985_v29 = vpop.f32.mrf.mxu1  ;;  %v1072_v47 = vmul.f32 %v1667_v19, %v1667_v19 }
 0x125   :  { %v1132_v30 = vadd.f32 %v1131_v24, %v1069_v23  ;;  %1569 = vst [vmem:[#allocation7 + $0x48] sm:$0xff] %v1449_v25   ;;  %v1444_v31 = vpack.c.bf16 %v466_v26, %v463_v13  ;;  %v997_v32 = vadd.f32 %v996_v21, %v466_v26  ;;  %v1070_v33 = vmul.f32 %v466_v26, %v466_v26 }
 0x126   :  { %v1670_v35 = vpop.f32.mrf.mxu0  ;;  %1585 = vst [vmem:[#allocation7 + $0xc8] sm:$0xff] %v1529_v28   ;;  %v1524_v36 = vpack.c.bf16 %v1985_v29, %v1979_v14  ;;  %v1989_v37 = vpop.f32.mrf.mxu1 }
 0x127   :  { %1568 = vst [vmem:[#allocation7 + $0x40] sm:$0xff] %v1444_v31   ;;  %v998_v39 = vadd.f32 %v1666_v6, %v997_v32  ;;  %v1133_v40 = vadd.f32 %v1132_v30, %v1070_v33  ;;  %v1075_v11 = vmul.f32 %v1670_v35, %v1670_v35 }
 0x128   :  { %v479_v44 = vpop.f32.mrf.mxu0  ;;  %1584 = vst [vmem:[#allocation7 + $0xc0] sm:$0xff] %v1524_v36   ;;  %v1991_v46 = vpop.f32.mrf.mxu1 }
 0x129   :  { %v1134_v48 = vadd.f32 %v1133_v40, %v1071_v38  ;;  %v999_v51 = vadd.f32 %v1667_v19, %v998_v39  ;;  %v1073_v57 = vmul.f32 %v479_v44, %v479_v44 }
 0x12a   :  { %v1671_v52 = vpop.f32.mrf.mxu0  ;;  %v1993_v53 = vpop.f32.mrf.mxu1 }
 0x12b   :  { %v1000_v54 = vadd.f32 %v999_v51, %v479_v44  ;;  %v1135_v58 = vadd.f32 %v1134_v48, %v1072_v47  ;;  %v1459_v59 = vpack.c.bf16 %v1671_v52, %v1670_v35  ;;  %v1539_v61 = vpack.c.bf16 %v1993_v53, %v1989_v37 }
 0x12c   :  { %v482_v60 = vpop.f32.mrf.mxu0  ;;  %v1997_v63 = vpop.f32.mrf.mxu1  ;;  %v1076_v18 = vmul.f32 %v1671_v52, %v1671_v52 }
 0x12d   :  { %v1136_v1 = vadd.f32 %v1135_v58, %v1073_v57  ;;  %1571 = vst [vmem:[#allocation7 + $0x58] sm:$0xff] %v1459_v59   ;;  %v1454_v2 = vpack.c.bf16 %v482_v60, %v479_v44  ;;  %v1001_v4 = vadd.f32 %v1000_v54, %v482_v60  ;;  %v1074_v5 = vmul.f32 %v482_v60, %v482_v60 }
 0x12e   :  { %v1674_v6 = vpop.f32.mrf.mxu0  ;;  %1587 = vst [vmem:[#allocation7 + $0xd8] sm:$0xff] %v1539_v61   ;;  %v1534_v7 = vpack.c.bf16 %v1997_v63, %v1991_v46  ;;  %v2001_v9 = vpop.f32.mrf.mxu1 }
 0x12f   :  { %1570 = vst [vmem:[#allocation7 + $0x50] sm:$0xff] %v1454_v2   ;;  %v1002_v12 = vadd.f32 %v1670_v35, %v1001_v4  ;;  %v1137_v13 = vadd.f32 %v1136_v1, %v1074_v5  ;;  %v1079_v48 = vmul.f32 %v1674_v6, %v1674_v6 }
 0x130   :  { %v495_v15 = vpop.f32.mrf.mxu0  ;;  %1586 = vst [vmem:[#allocation7 + $0xd0] sm:$0xff] %v1534_v7   ;;  %v2003_v16 = vpop.f32.mrf.mxu1 }
 0x131   :  { %v1138_v19 = vadd.f32 %v1137_v13, %v1075_v11  ;;  %v1003_v21 = vadd.f32 %v1671_v52, %v1002_v12  ;;  %v1077_v26 = vmul.f32 %v495_v15, %v495_v15 }
 0x132   :  { %v1675_v23 = vpop.f32.mrf.mxu0  ;;  %v2005_v24 = vpop.f32.mrf.mxu1 }
 0x133   :  { %v1004_v25 = vadd.f32 %v1003_v21, %v495_v15  ;;  %v1139_v28 = vadd.f32 %v1138_v19, %v1076_v18  ;;  %v1469_v30 = vpack.c.bf16 %v1675_v23, %v1674_v6  ;;  %v1549_v32 = vpack.c.bf16 %v2005_v24, %v2001_v9 }
 0x134   :  { %v498_v31 = vpop.f32.mrf.mxu0  ;;  %v2009_v33 = vpop.f32.mrf.mxu1  ;;  %v1080_v58 = vmul.f32 %v1675_v23, %v1675_v23 }
 0x135   :  { %v1140_v35 = vadd.f32 %v1139_v28, %v1077_v26  ;;  %1573 = vst [vmem:[#allocation7 + $0x68] sm:$0xff] %v1469_v30   ;;  %v1464_v36 = vpack.c.bf16 %v498_v31, %v495_v15  ;;  %v1005_v38 = vadd.f32 %v1004_v25, %v498_v31  ;;  %v1078_v39 = vmul.f32 %v498_v31, %v498_v31 }
 0x136   :  { %v1678_v40 = vpop.f32.mrf.mxu0  ;;  %1589 = vst [vmem:[#allocation7 + $0xe8] sm:$0xff] %v1549_v32   ;;  %v1544_v44 = vpack.c.bf16 %v2009_v33, %v2003_v16  ;;  %v2013_v47 = vpop.f32.mrf.mxu1 }
 0x137   :  { %1572 = vst [vmem:[#allocation7 + $0x60] sm:$0xff] %v1464_v36   ;;  %v1006_v51 = vadd.f32 %v1674_v6, %v1005_v38  ;;  %v1141_v52 = vadd.f32 %v1140_v35, %v1078_v39 }
 0x138   :  { %v511_v54 = vpop.f32.mrf.mxu0  ;;  %1588 = vst [vmem:[#allocation7 + $0xe0] sm:$0xff] %v1544_v44   ;;  %v2015_v57 = vpop.f32.mrf.mxu1 }
 0x139   :  { %v1142_v59 = vadd.f32 %v1141_v52, %v1079_v48  ;;  %v1007_v60 = vadd.f32 %v1675_v23, %v1006_v51  ;;  %v1081_v4 = vmul.f32 %v511_v54, %v511_v54  ;;  %v1083_v23 = vmul.f32 %v1678_v40, %v1678_v40 }
 0x13a   :  { %v1679_v61 = vpop.f32.mrf.mxu0  ;;  %v2017_v1 = vpop.f32.mrf.mxu1 }
 0x13b   :  { %v1008_v2 = vadd.f32 %v1007_v60, %v511_v54  ;;  %v1143_v5 = vadd.f32 %v1142_v59, %v1080_v58  ;;  %v1479_v7 = vpack.c.bf16 %v1679_v61, %v1678_v40  ;;  %v1559_v6 = vpack.c.bf16 %v2017_v1, %v2013_v47 }
 0x13c   :  { %v514_v11 = vpop.f32.mrf.mxu0  ;;  %v2021_v12 = vpop.f32.mrf.mxu1  ;;  %v1084_v28 = vmul.f32 %v1679_v61, %v1679_v61 }
 0x13d   :  { %v1144_v13 = vadd.f32 %v1143_v5, %v1081_v4  ;;  %1575 = vst [vmem:[#allocation7 + $0x78] sm:$0xff] %v1479_v7   ;;  %v1474_v15 = vpack.c.bf16 %v514_v11, %v511_v54  ;;  %v1009_v18 = vadd.f32 %v1008_v2, %v514_v11  ;;  %v1082_v19 = vmul.f32 %v514_v11, %v514_v11 }
 0x13e   :  { %1591 = vst [vmem:[#allocation7 + $0xf8] sm:$0xff] %v1559_v6   ;;  %v1554_v21 = vpack.c.bf16 %v2021_v12, %v2015_v57 }
 0x13f   :  { %1574 = vst [vmem:[#allocation7 + $0x70] sm:$0xff] %v1474_v15   ;;  %v1010_v25 = vadd.f32 %v1678_v40, %v1009_v18  ;;  %v1145_v26 = vadd.f32 %v1144_v13, %v1082_v19 }
 0x140   :  { %1590 = vst [vmem:[#allocation7 + $0xf0] sm:$0xff] %v1554_v21  }
 0x141   :  { %v1011_v30 = vadd.f32 %v1679_v61, %v1010_v25  ;;  %v1146_v31 = vadd.f32 %v1145_v26, %v1083_v23 }
 0x142   :  { %1827 = shalt.err (!%p1824_p0)
}
 0x143   :  { %1199 = dma.vmem_to_hbm [thread:$0]  %s1194_s1, 4096, %s2135_s2, [#allocation4], %s1885_s18, %s1885_s18, %s1886_s19   ;;  %v1085_v32 = vmul.f32 %v1931_v43, %v1931_v43  ;;  %v1147_v35 = vadd.f32 %v1146_v31, %v1084_v28  ;;  %v1012_v36 = vadd.f32 %v1011_v30, %v1931_v43  ;;  %v1086_v39 = vmul.f32 %v1937_v50, %v1937_v50 }
 0x144   :  { %v1087_v44 = vmul.f32 %v1929_v41, %v1929_v41  ;;  %v1088_v52 = vmul.f32 %v1933_v45, %v1933_v45  ;;  %v1089_v59 = vmul.f32 %v1943_v62, %v1943_v62  ;;  %v1090_v2 = vmul.f32 %v1949_v10, %v1949_v10  ;;  %s1890_s2 = smov [#allocation8]   ;;  %s1891_s5 = smov [#allocation10]  }
 0x145   :  { %v1013_v38 = vadd.f32 %v1012_v36, %v1937_v50  ;;  %v1148_v40 = vadd.f32 %v1147_v35, %v1085_v32  ;;  %v1093_v6 = vmul.f32 %v1955_v22, %v1955_v22  ;;  %v1094_v18 = vmul.f32 %v1961_v34, %v1961_v34  ;;  %s1206_s30 = sshll.u32 %s1890_s2, 4  ;;  %s1216_s6 = sshll.u32 %s1891_s5, 4  ;;  %s1207_s30 = int_to_ptr.vmem [resolvable:$true] %s1206_s30  ;;  %s1217_s6 = int_to_ptr.vmem [resolvable:$true] %s1216_s6 }
 0x146   :  { %v1097_v26 = vmul.f32 %v1967_v49, %v1967_v49  ;;  %v1098_v31 = vmul.f32 %v1973_v0, %v1973_v0  ;;  %s1836_s7 = scalar_lea.vmem %s1207_s30, 16  ;;  %s1840_s8 = scalar_lea.vmem %s1207_s30, 32 }
 0x147   :  { %v1014_v48 = vadd.f32 %v1929_v41, %v1013_v38  ;;  %v1149_v51 = vadd.f32 %v1148_v40, %v1086_v39  ;;  %v1091_v41 = vmul.f32 %v1941_v56, %v1941_v56  ;;  %v1101_v39 = vmul.f32 %v1979_v14, %v1979_v14  ;;  %p1837_p1 = scmp.ne.s32.totalorder %s1207_s30, %s1836_s7  ;;  %p1841_p2 = scmp.lt.s32.totalorder %s1207_s30, %s1207_s30 }
 0x148   :  { %p1842_p3 = scmp.lt.s32.totalorder %s1840_s8, %s1836_s7 }
 0x149   :  { %v1150_v54 = vadd.f32 %v1149_v51, %v1087_v44  ;;  %v1015_v58 = vadd.f32 %v1933_v45, %v1014_v48  ;;  %v1092_v45 = vmul.f32 %v1945_v3, %v1945_v3  ;;  %v1102_v48 = vmul.f32 %v1985_v29, %v1985_v29 }
 0x14a   :  { %p1843_p4 = por %p1842_p3, %p1841_p2 }
 0x14b   :  { %v1016_v43 = vadd.f32 %v1015_v58, %v1943_v62  ;;  %v1151_v60 = vadd.f32 %v1150_v54, %v1088_v52 }
 0x14c   :  { %p1844_p5 = pnand %p1843_p4, %p1837_p1 }
 0x14d   :  { %v1152_v50 = vadd.f32 %v1151_v60, %v1089_v59  ;;  %v1017_v61 = vadd.f32 %v1016_v43, %v1949_v10  ;;  %v1105_v43 = vmul.f32 %v1991_v46, %v1991_v46 }
 0x14f   :  { %v1018_v4 = vadd.f32 %v1941_v56, %v1017_v61  ;;  %v1153_v5 = vadd.f32 %v1152_v50, %v1090_v2  ;;  %v1095_v56 = vmul.f32 %v1953_v17, %v1953_v17  ;;  %v1106_v50 = vmul.f32 %v1997_v63, %v1997_v63 }
 0x151   :  { %v1154_v7 = vadd.f32 %v1153_v5, %v1091_v41  ;;  %v1019_v11 = vadd.f32 %v1945_v3, %v1018_v4  ;;  %v1096_v3 = vmul.f32 %v1957_v27, %v1957_v27  ;;  %v1109_v5 = vmul.f32 %v2003_v16, %v2003_v16 }
 0x153   :  { %v1020_v62 = vadd.f32 %v1019_v11, %v1955_v22  ;;  %v1155_v13 = vadd.f32 %v1154_v7, %v1092_v45  ;;  %v1110_v11 = vmul.f32 %v2009_v33, %v2009_v33 }
 0x155   :  { %v1156_v15 = vadd.f32 %v1155_v13, %v1093_v6  ;;  %v1021_v10 = vadd.f32 %v1020_v62, %v1961_v34 }
 0x157   :  { %v1022_v19 = vadd.f32 %v1953_v17, %v1021_v10  ;;  %v1157_v21 = vadd.f32 %v1156_v15, %v1094_v18  ;;  %v1099_v17 = vmul.f32 %v1965_v42, %v1965_v42  ;;  %v1113_v10 = vmul.f32 %v2015_v57, %v2015_v57 }
 0x159   :  { %v1158_v23 = vadd.f32 %v1157_v21, %v1095_v56  ;;  %v1023_v25 = vadd.f32 %v1957_v27, %v1022_v19  ;;  %v1100_v27 = vmul.f32 %v1969_v55, %v1969_v55  ;;  %v1114_v19 = vmul.f32 %v2021_v12, %v2021_v12 }
 0x15b   :  { %v1024_v22 = vadd.f32 %v1023_v25, %v1967_v49  ;;  %v1159_v28 = vadd.f32 %v1158_v23, %v1096_v3 }
 0x15d   :  { %v1160_v30 = vadd.f32 %v1159_v28, %v1097_v26  ;;  %v1025_v34 = vadd.f32 %v1024_v22, %v1973_v0 }
 0x15f   :  { %v1026_v32 = vadd.f32 %v1965_v42, %v1025_v34  ;;  %v1161_v35 = vadd.f32 %v1160_v30, %v1098_v31  ;;  %v1103_v42 = vmul.f32 %v1977_v8, %v1977_v8 }
 0x161   :  { %v1162_v36 = vadd.f32 %v1161_v35, %v1099_v17  ;;  %v1027_v38 = vadd.f32 %v1969_v55, %v1026_v32  ;;  %v1104_v55 = vmul.f32 %v1981_v20, %v1981_v20  ;;  %v980_v35 = vld [vmem:[#allocation8] sm:$0x1] }
 0x163   :  { %v1028_v49 = vadd.f32 %v1027_v38, %v1979_v14  ;;  %v1163_v40 = vadd.f32 %v1162_v36, %v1100_v27  ;;  %v1052_v36 = vld [vmem:[#allocation10] sm:$0x1] }
 0x165   :  { %v1164_v44 = vadd.f32 %v1163_v40, %v1101_v39  ;;  %v1029_v0 = vadd.f32 %v1028_v49, %v1985_v29 }
 0x167   :  { %v1030_v51 = vadd.f32 %v1977_v8, %v1029_v0  ;;  %v1165_v52 = vadd.f32 %v1164_v44, %v1102_v48  ;;  %v1107_v8 = vmul.f32 %v1989_v37, %v1989_v37 }
 0x169   :  { %v1166_v54 = vadd.f32 %v1165_v52, %v1103_v42  ;;  %v1031_v58 = vadd.f32 %v1981_v20, %v1030_v51  ;;  %v1108_v20 = vmul.f32 %v1993_v53, %v1993_v53 }
 0x16b   :  { %v1032_v14 = vadd.f32 %v1031_v58, %v1991_v46  ;;  %v1167_v59 = vadd.f32 %v1166_v54, %v1104_v55 }
 0x16d   :  { %v1168_v60 = vadd.f32 %v1167_v59, %v1105_v43  ;;  %v1033_v29 = vadd.f32 %v1032_v14, %v1997_v63 }
 0x16f   :  { %v1034_v61 = vadd.f32 %v1989_v37, %v1033_v29  ;;  %v1169_v2 = vadd.f32 %v1168_v60, %v1106_v50  ;;  %v1111_v37 = vmul.f32 %v2001_v9, %v2001_v9 }
 0x171   :  { %v1170_v41 = vadd.f32 %v1169_v2, %v1107_v8  ;;  %v1035_v4 = vadd.f32 %v1993_v53, %v1034_v61  ;;  %v1112_v53 = vmul.f32 %v2005_v24, %v2005_v24 }
 0x173   :  { %v1036_v46 = vadd.f32 %v1035_v4, %v2003_v16  ;;  %v1171_v45 = vadd.f32 %v1170_v41, %v1108_v20 }
 0x175   :  { %v1172_v7 = vadd.f32 %v1171_v45, %v1109_v5  ;;  %v1037_v63 = vadd.f32 %v1036_v46, %v2009_v33 }
 0x177   :  { %v1038_v62 = vadd.f32 %v2001_v9, %v1037_v63  ;;  %v1173_v6 = vadd.f32 %v1172_v7, %v1110_v11  ;;  %v1115_v9 = vmul.f32 %v2013_v47, %v2013_v47 }
 0x179   :  { %v1174_v13 = vadd.f32 %v1173_v6, %v1111_v37  ;;  %v1039_v15 = vadd.f32 %v2005_v24, %v1038_v62  ;;  %v1116_v24 = vmul.f32 %v2017_v1, %v2017_v1 }
 0x17b   :  { %v1040_v16 = vadd.f32 %v1039_v15, %v2015_v57  ;;  %v1175_v18 = vadd.f32 %v1174_v13, %v1112_v53 }
 0x17d   :  { %v1176_v56 = vadd.f32 %v1175_v18, %v1113_v10  ;;  %v1041_v33 = vadd.f32 %v1040_v16, %v2021_v12 }
 0x17f   :  { %v1042_v21 = vadd.f32 %v2013_v47, %v1041_v33  ;;  %v1177_v3 = vadd.f32 %v1176_v56, %v1114_v19 }
 0x181   :  { %v1043_v23 = vadd.f32 %v2017_v1, %v1042_v21  ;;  %v1178_v25 = vadd.f32 %v1177_v3, %v1115_v9 }
 0x183   :  { %v1044_v57 = vrot.slane %v1043_v23, 4  ;;  %v1179_v22 = vadd.f32 %v1178_v25, %v1116_v24 }
 0x185   :  { %v1045_v26 = vadd.f32 %v1044_v57, %v1043_v23  ;;  %v1180_v28 = vrot.slane %v1179_v22, 4 }
 0x187   :  { %v1046_v30 = vrot.slane %v1045_v26, 2  ;;  %v1181_v34 = vadd.f32 %v1180_v28, %v1179_v22 }
 0x189   :  { %v1047_v31 = vadd.f32 %v1046_v30, %v1045_v26  ;;  %v1182_v12 = vrot.slane %v1181_v34, 2 }
 0x18b   :  { %v1183_v17 = vadd.f32 %v1182_v12, %v1181_v34  ;;  %v1048_v32 = vrot.slane %v1047_v31, 1 }
 0x18d   :  { %v1049_v47 = vadd.f32 %v1048_v32, %v1047_v31  ;;  %v1184_v27 = vrot.slane %v1183_v17, 1 }
 0x18f   :  { %v1050_v1 = vadd.f32 %v1049_v47, %v980_v35  ;;  %v1185_v38 = vadd.f32 %v1184_v27, %v1183_v17 }
 0x191   :  { %1051 = vst [vmem:[#allocation8] sm:$0x1] %v1050_v1  ;;  %v1186_v49 = vadd.f32 %v1185_v38, %v1052_v36 }
 0x192   :  { %1847 = shalt.err (!%p1844_p5)
}
 0x193   :  { %1209 = dma.vmem_to_hbm [thread:$0]  %s1207_s30, 16, %s2136_s3, [#allocation9]   ;;  %1187 = vst [vmem:[#allocation10] sm:$0x1] %v1186_v49 }
 0x194   :  { %s1856_s11 = scalar_lea.vmem %s1217_s6, 16  ;;  %s1860_s12 = scalar_lea.vmem %s1217_s6, 32 }
 0x195   :  { %p1857_p6 = scmp.ne.s32.totalorder %s1217_s6, %s1856_s11  ;;  %p1861_p7 = scmp.lt.s32.totalorder %s1217_s6, %s1217_s6 }
 0x196   :  { %p1862_p8 = scmp.lt.s32.totalorder %s1860_s12, %s1856_s11 }
 0x198   :  { %p1863_p9 = por %p1862_p8, %p1861_p7 }
 0x19a   :  { %p1864_p10 = pnand %p1863_p9, %p1857_p6 }
 0x19c   :  { %1867 = shalt.err (!%p1864_p10)
}
 0x19d   :  { %1219 = dma.vmem_to_hbm [thread:$0]  %s1217_s6, 16, %s2137_s4, [#allocation9]  }
 0x19e   :  { %1880 = dma.done.wait [#allocation4], 4096  }
 0x19f   :  { %1881 = vsyncadd [#allocation4], 4294963200 }
 0x1a0   :  { %1882 = dma.done.wait [#allocation9], 32  }
 0x1a1   :  { %1883 = vsyncadd [#allocation9], 4294967264 }
 0x1a2   :  { %1229 = vsyncpa [#allocation3], 1 }
 0x1a3   :  { %1230 = vsyncpa [#allocation6], 1 }
 0x1a4   :  { %1231 = vsyncpa [#allocation4], 1 }
 0x1a5   :  { %1232 = vsyncpa [#allocation9], 1 }

</bundles_post_ra>
